<compile_context>
chip_gen: v7x
topology: tpu7x:2x2x1
jax: 0.10.0
libtpu: 0.0.40
codegen_flags: <defaults>
</compile_context>

<pallas_src>
import functools

import jax
import jax.numpy as jnp
from jax.experimental import pallas as pl
from jax.experimental.pallas import tpu as pltpu


def _round_up(x, m):
    return ((x + m - 1) // m) * m


# ---------------------------------------------------------------------------
# Prologue: row-normalize both views once, fold 1/T into view1, emit bf16.
# Padded (all-zero) rows stay exactly zero (ss=0 -> rsqrt(eps^2)*0 = 0).
# ---------------------------------------------------------------------------
def _normalize_kernel(v1_ref, v2_ref, o1_ref, o2_ref, *, inv_t):
    eps_sq = 1e-24  # (F.normalize eps = 1e-12) ** 2, clamp on the sum of squares

    def _norm(x, scale):
        x = x.astype(jnp.float32)
        ss = jnp.sum(x * x, axis=-1, keepdims=True)
        return x * (jax.lax.rsqrt(jnp.maximum(ss, eps_sq)) * scale)

    o1_ref[...] = _norm(v1_ref[...], inv_t).astype(o1_ref.dtype)
    o2_ref[...] = _norm(v2_ref[...], 1.0).astype(o2_ref.dtype)


# ---------------------------------------------------------------------------
# Main kernel: online denominator + diagonal accumulation over column blocks.
# ---------------------------------------------------------------------------
def _infonce_kernel(v1n_ref, v2n_ref, out_ref, ttl_ref, diag_ref, *,
                    tm, tn, n_real, n_pad):
    i = pl.program_id(0)  # row block  ("parallel")
    j = pl.program_id(1)  # col block  ("arbitrary" reduction)

    @pl.when(j == 0)
    def _init():
        ttl_ref[...] = jnp.zeros_like(ttl_ref)
        diag_ref[...] = jnp.zeros_like(diag_ref)

    # (tm, tn) temperature-scaled similarities on the MXU: bf16 operands, f32
    # accumulation, contracting the last dim of BOTH operands (no v2.T copy).
    logits = jax.lax.dot_general(
        v1n_ref[...], v2n_ref[...],
        dimension_numbers=(((1,), (1,)), ((), ())),
        preferred_element_type=jnp.float32)

    # Online softmax denominator. No per-step masking: padded v2 rows are exactly
    # zero, so each padded column contributes exp(0)=1; that constant offset is
    # removed once in _finalize.
    # TODO(synk): logits are bounded by 1/temperature; for temperature < ~0.0114
    # exp() overflows f32 — same behaviour as the PyTorch reference.
    ttl_ref[...] += jnp.sum(jnp.exp(logits), axis=-1, keepdims=True)

    # Positive score = diagonal of the (already temperature-scaled) logits. Only
    # blocks whose row and column ranges overlap can hold diagonal cells, so the
    # iota/select/lane-reduce is gated behind a scalar condition.
    @pl.when(jnp.logical_and(j * tn < (i + 1) * tm, (j + 1) * tn > i * tm))
    def _diag():
        rows = jax.lax.broadcasted_iota(jnp.int32, (tm, tn), 0) + i * tm
        cols = jax.lax.broadcasted_iota(jnp.int32, (tm, tn), 1) + j * tn
        diag_ref[...] += jnp.sum(jnp.where(rows == cols, logits, 0.0),
                                 axis=-1, keepdims=True)

    @pl.when(j == pl.num_programs(1) - 1)
    def _finalize():
        ttl = ttl_ref[...]
        if n_pad != n_real:                    # static: remove padded-column exp(0)'s
            ttl = ttl - float(n_pad - n_real)
        per_row = jnp.log(ttl) - diag_ref[...]  # -log(exp(diag)/ttl)
        if n_pad != n_real:                    # static: zero padded rows
            row_ids = jax.lax.broadcasted_iota(jnp.int32, (tm, 1), 0) + i * tm
            per_row = jnp.where(row_ids < n_real, per_row, 0.0)
        out_ref[...] = per_row


def _pick_tiles(n, block_rows, block_cols):
    align = 16  # bf16 sublane packing for the normalized operands
    n_al = _round_up(n, align)
    tm = min(_round_up(block_rows, align), n_al)
    tn = min(_round_up(block_cols, align), tm)
    tm = (tm // tn) * tn            # tm a multiple of tn -> one padded N fits both
    n_pad = _round_up(n, tm)
    return tm, tn, n_pad


def infonce_loss(view1, view2, temperature, *, block_rows=512, block_cols=256):
    """Pallas TPU InfoNCE forward. view1, view2: (N, D) float arrays -> scalar f32."""
    assert view1.shape == view2.shape and view1.ndim == 2
    n, d = view1.shape
    d_pad = _round_up(d, 128)                 # lane-dense feature axis
    tm, tn, n_pad = _pick_tiles(n, block_rows, block_cols)

    v1 = jnp.asarray(view1, jnp.float32)
    v2 = jnp.asarray(view2, jnp.float32)
    if (n_pad, d_pad) != (n, d):
        v1 = jnp.pad(v1, ((0, n_pad - n), (0, d_pad - d)))
        v2 = jnp.pad(v2, ((0, n_pad - n), (0, d_pad - d)))

    # ---- prologue: normalize once, fold 1/T into view1, cast to bf16 ----
    pr = min(n_pad, 128)
    while n_pad % pr:
        pr -= 16
    v1n, v2n = pl.pallas_call(
        functools.partial(_normalize_kernel, inv_t=float(1.0 / temperature)),
        out_shape=(jax.ShapeDtypeStruct((n_pad, d_pad), jnp.bfloat16),
                   jax.ShapeDtypeStruct((n_pad, d_pad), jnp.bfloat16)),
        grid_spec=pltpu.PrefetchScalarGridSpec(
            num_scalar_prefetch=0,
            grid=(n_pad // pr,),
            in_specs=[pl.BlockSpec((pr, d_pad), lambda i: (i, 0)),
                      pl.BlockSpec((pr, d_pad), lambda i: (i, 0))],
            out_specs=(pl.BlockSpec((pr, d_pad), lambda i: (i, 0)),
                       pl.BlockSpec((pr, d_pad), lambda i: (i, 0))),
        ),
        compiler_params=pltpu.CompilerParams(dimension_semantics=("parallel",)),
    )(v1, v2)

    # ---- main kernel: online accumulation over column blocks ----
    est = (2 * tm * d_pad * 2        # v1n block, bf16, double-buffered
           + 2 * tn * d_pad * 2      # v2n block, bf16, double-buffered
           + 4 * tm * 4              # out + ttl + diag scratch (f32)
           + 2 * tm * tn * 4)        # logits tile / exp temporaries
    vmem_limit = int(min(max(2 * est, 32 << 20), 48 << 20))  # stay inside v7x's 64 MiB

    kernel = functools.partial(_infonce_kernel, tm=tm, tn=tn, n_real=n, n_pad=n_pad)
    per_row = pl.pallas_call(
        kernel,
        out_shape=jax.ShapeDtypeStruct((n_pad, 1), jnp.float32),
        grid_spec=pltpu.PrefetchScalarGridSpec(
            num_scalar_prefetch=0,
            grid=(n_pad // tm, n_pad // tn),
            in_specs=[
                pl.BlockSpec((tm, d_pad), lambda i, j: (i, 0)),   # v1n row block
                pl.BlockSpec((tn, d_pad), lambda i, j: (j, 0)),   # v2n col block
            ],
            out_specs=pl.BlockSpec((tm, 1), lambda i, j: (i, 0)),
            scratch_shapes=[
                pltpu.VMEM((tm, 1), jnp.float32),   # ttl (denominator) accumulator
                pltpu.VMEM((tm, 1), jnp.float32),   # diag (positive score) accumulator
            ],
        ),
        compiler_params=pltpu.CompilerParams(
            dimension_semantics=("parallel", "arbitrary"),
            vmem_limit_bytes=vmem_limit),
    )(v1n, v2n)

    # Tiny final reduction over N per-row losses (left to XLA so the row-block
    # grid axis stays "parallel" across TensorCores).
    return jnp.sum(per_row) / n


def infonce_ref(view1, view2, temperature):
    """Pure-JAX f32 reference mirroring the PyTorch module."""
    eps = 1e-12
    v1 = view1 / jnp.maximum(jnp.linalg.norm(view1, axis=1, keepdims=True), eps)
    v2 = view2 / jnp.maximum(jnp.linalg.norm(view2, axis=1, keepdims=True), eps)
    pos = jnp.exp(jnp.sum(v1 * v2, axis=-1) / temperature)
    ttl = jnp.sum(jnp.exp(v1 @ v2.T / temperature), axis=1)
    return jnp.mean(-jnp.log(pos / ttl))


if __name__ == "__main__":
    key = jax.random.PRNGKey(0)
    k1, k2, k3, k4, k5, k6 = jax.random.split(key, 6)
    temperature = 0.2
    # bf16 MXU operands (f32 accumulation) -> loosened tolerances vs the f32 reference.
    tol = dict(rtol=3e-2, atol=3e-2)

    # Case 1: small shape, default tile config (single block, padded rows/cols).
    N, D = 8, 32
    view1 = jax.random.normal(k1, (N, D), dtype=jnp.float32)
    view2 = jax.random.normal(k2, (N, D), dtype=jnp.float32)
    loss = infonce_loss(view1, view2, temperature)
    jax.block_until_ready(loss)
    ref = infonce_ref(view1, view2, temperature)
    assert jnp.allclose(loss, ref, **tol), (loss, ref)

    # Case 2: unaligned N with small square tiles -> (2, 2) grid, online
    # accumulation, padded-row/column handling, diagonal-block gating.
    N2, D2 = 20, 48
    view1b = jax.random.normal(k3, (N2, D2), dtype=jnp.float32)
    view2b = jax.random.normal(k4, (N2, D2), dtype=jnp.float32)
    loss2 = infonce_loss(view1b, view2b, temperature, block_rows=16, block_cols=16)
    jax.block_until_ready(loss2)
    ref2 = infonce_ref(view1b, view2b, temperature)
    assert jnp.allclose(loss2, ref2, **tol), (loss2, ref2)

    # Case 3: rectangular tiles (TM > TN) -> exercises the row/column range
    # overlap condition for the positive-score blocks.
    N3, D3 = 40, 64
    view1c = jax.random.normal(k5, (N3, D3), dtype=jnp.float32)
    view2c = jax.random.normal(k6, (N3, D3), dtype=jnp.float32)
    loss3 = infonce_loss(view1c, view2c, temperature, block_rows=32, block_cols=16)
    jax.block_until_ready(loss3)
    ref3 = infonce_ref(view1c, view2c, temperature)
    assert jnp.allclose(loss3, ref3, **tol), (loss3, ref3)

    print("KERNEL_OK")
</pallas_src>

<mosaic_0001>
module attributes {stable_mosaic.version = 11 : i64} {
  func.func @_normalize_kernel(%arg0: i32, %arg1: memref<16x128xf32, #tpu.memory_space<vmem>>, %arg2: memref<16x128xf32, #tpu.memory_space<vmem>>, %arg3: memref<16x128xbf16, #tpu.memory_space<vmem>>, %arg4: memref<16x128xbf16, #tpu.memory_space<vmem>>) attributes {dimension_semantics = [#tpu.dimension_semantics<parallel>], iteration_bounds = array<i64: 1>, scalar_prefetch = 0 : i64, scratch_operands = 0 : i64, tpu.core_type = #tpu.core_type<tc>, window_params = [{transform_indices = @transform_0, window_bounds = array<i64: 16, 128>}, {transform_indices = @transform_1, window_bounds = array<i64: 16, 128>}, {transform_indices = @transform_2, window_bounds = array<i64: 16, 128>}, {transform_indices = @transform_3, window_bounds = array<i64: 16, 128>}]} {
    %c0 = arith.constant 0 : index
    %c0_0 = arith.constant 0 : index
    %0 = vector.load %arg1[%c0, %c0_0] : memref<16x128xf32, #tpu.memory_space<vmem>>, vector<16x128xf32>
    %1 = arith.mulf %0, %0 : vector<16x128xf32>
    %cst = arith.constant dense<0.000000e+00> : vector<16xf32>
    %2 = vector.multi_reduction <add>, %1, %cst [1] : vector<16x128xf32> to vector<16xf32>
    %3 = vector.shape_cast %2 : vector<16xf32> to vector<16x1xf32>
    %cst_1 = arith.constant 1.000000e-24 : f32
    %4 = vector.broadcast %cst_1 : f32 to vector<16x1xf32>
    %5 = arith.maximumf %3, %4 : vector<16x1xf32>
    %6 = math.rsqrt %5 : vector<16x1xf32>
    %cst_2 = arith.constant 5.000000e+00 : f32
    %7 = vector.broadcast %cst_2 : f32 to vector<16x1xf32>
    %8 = arith.mulf %6, %7 : vector<16x1xf32>
    %9 = vector.broadcast %8 : vector<16x1xf32> to vector<16x128xf32>
    %10 = arith.mulf %0, %9 : vector<16x128xf32>
    %11 = arith.truncf %10 : vector<16x128xf32> to vector<16x128xbf16>
    %c0_3 = arith.constant 0 : index
    %c0_4 = arith.constant 0 : index
    %12 = vector.load %arg3[%c0_3, %c0_4] : memref<16x128xbf16, #tpu.memory_space<vmem>>, vector<16x128xbf16>
    tpu.vector_store %arg3[%c0_3, %c0_4], %11 {strides = array<i32>} : memref<16x128xbf16, #tpu.memory_space<vmem>>, vector<16x128xbf16>,
    %c0_5 = arith.constant 0 : index
    %c0_6 = arith.constant 0 : index
    %13 = vector.load %arg2[%c0_5, %c0_6] : memref<16x128xf32, #tpu.memory_space<vmem>>, vector<16x128xf32>
    %14 = arith.mulf %13, %13 : vector<16x128xf32>
    %cst_7 = arith.constant dense<0.000000e+00> : vector<16xf32>
    %15 = vector.multi_reduction <add>, %14, %cst_7 [1] : vector<16x128xf32> to vector<16xf32>
    %16 = vector.shape_cast %15 : vector<16xf32> to vector<16x1xf32>
    %cst_8 = arith.constant 1.000000e-24 : f32
    %17 = vector.broadcast %cst_8 : f32 to vector<16x1xf32>
    %18 = arith.maximumf %16, %17 : vector<16x1xf32>
    %19 = math.rsqrt %18 : vector<16x1xf32>
    %cst_9 = arith.constant 1.000000e+00 : f32
    %20 = vector.broadcast %cst_9 : f32 to vector<16x1xf32>
    %21 = arith.mulf %19, %20 : vector<16x1xf32>
    %22 = vector.broadcast %21 : vector<16x1xf32> to vector<16x128xf32>
    %23 = arith.mulf %13, %22 : vector<16x128xf32>
    %24 = arith.truncf %23 : vector<16x128xf32> to vector<16x128xbf16>
    %c0_10 = arith.constant 0 : index
    %c0_11 = arith.constant 0 : index
    %25 = vector.load %arg4[%c0_10, %c0_11] : memref<16x128xbf16, #tpu.memory_space<vmem>>, vector<16x128xbf16>
    tpu.vector_store %arg4[%c0_10, %c0_11], %24 {strides = array<i32>} : memref<16x128xbf16, #tpu.memory_space<vmem>>, vector<16x128xbf16>,
    return
  }
  func.func @transform_0(%arg0: i32) -> (i32, i32) {
    %c0_i32 = arith.constant 0 : i32
    %c0_i32_0 = arith.constant 0 : i32
    return %arg0, %c0_i32 : i32, i32
  }
  func.func @transform_1(%arg0: i32) -> (i32, i32) {
    %c0_i32 = arith.constant 0 : i32
    %c0_i32_0 = arith.constant 0 : i32
    return %arg0, %c0_i32 : i32, i32
  }
  func.func @transform_2(%arg0: i32) -> (i32, i32) {
    %c0_i32 = arith.constant 0 : i32
    %c0_i32_0 = arith.constant 0 : i32
    return %arg0, %c0_i32 : i32, i32
  }
  func.func @transform_3(%arg0: i32) -> (i32, i32) {
    %c0_i32 = arith.constant 0 : i32
    %c0_i32_0 = arith.constant 0 : i32
    return %arg0, %c0_i32 : i32, i32
  }
}

</mosaic_0001>

<bundles_post_ra>
// kernel: tpu_custom_call.1
= control target key start
LH: loop header
LB: loop body
LE: loop exit
PB: predicated region body
PF: predicated region fallthrough
CT: control target
= control target key end

     0   :  { %9 = vsyncpa [#allocation3], 0  ;;  %s340_s0 = inlined_call_operand.hbm [shape: f32[16,128], index: 0, kind: input, shape index: {}]   ;;  %s341_s1 = inlined_call_operand.hbm [shape: f32[16,128], index: 1, kind: input, shape index: {}]   ;;  %s342_s2 = inlined_call_operand.hbm [shape: bf16[16,128], index: 2, kind: output, shape index: {0}]   ;;  %s343_s3 = inlined_call_operand.hbm [shape: bf16[16,128], index: 3, kind: output, shape index: {1}]  }
   0x1   :  { %10 = vsyncpa [#allocation6], 0 }
   0x2   :  { %11 = vsyncpa [#allocation4], 0 }
   0x3   :  { %12 = vsyncpa [#allocation9], 0  ;;  %s257_s12 = smov [#allocation2]   ;;  %s161_s16 = scalar_lea.hbm %s340_s0, 256 }
   0x4   :  { %s18_s13 = sshll.u32 %s257_s12, 4  ;;  %p162_p0 = scmp.ne.s32.totalorder %s340_s0, %s161_s16  ;;  %s19_s13 = int_to_ptr.vmem [resolvable:$true] %s18_s13 }
   0x5   :  { %p165_p1 = scmp.lt.u32.totalorder %s161_s16, %s340_s0 }
   0x7   :  { %p167_p2 = pnand %p165_p1, %p162_p0 }
   0x9   :  { %170 = shalt.err (!%p167_p2)
}
   0xa   :  { %s171_s21 = scalar_lea.vmem %s19_s13, 256  ;;  %p176_p4 = scmp.lt.s32.totalorder %s19_s13, %s19_s13 }
   0xb   :  { %p172_p3 = scmp.ne.s32.totalorder %s19_s13, %s171_s21  ;;  %p177_p5 = scmp.lt.s32.totalorder %s171_s21, %s171_s21 }
   0xd   :  { %p178_p6 = por %p177_p5, %p176_p4 }
   0xf   :  { %p179_p7 = pnand %p178_p6, %p172_p3 }
  0x11   :  { %182 = shalt.err (!%p179_p7)
}
  0x12   :  { %s258_s22 = smov 128   ;;  %s259_s23 = smov 8  }
  0x13   :  { %24 = dma.hbm_to_vmem [thread:$0]  %s340_s0, 256, %s19_s13, [#allocation3], %s258_s22, %s258_s22, %s259_s23  }
  0x14   :  { %s260_s26 = smov [#allocation5]   ;;  %s183_s30 = scalar_lea.hbm %s341_s1, 256 }
  0x15   :  { %s30_s27 = sshll.u32 %s260_s26, 4  ;;  %p184_p8 = scmp.ne.s32.totalorder %s341_s1, %s183_s30  ;;  %s31_s27 = int_to_ptr.vmem [resolvable:$true] %s30_s27 }
  0x16   :  { %p187_p9 = scmp.lt.u32.totalorder %s183_s30, %s341_s1 }
  0x18   :  { %p189_p10 = pnand %p187_p9, %p184_p8 }
  0x1a   :  { %192 = shalt.err (!%p189_p10)
}
  0x1b   :  { %s193_s8 = scalar_lea.vmem %s31_s27, 256  ;;  %p198_p12 = scmp.lt.s32.totalorder %s31_s27, %s31_s27 }
  0x1c   :  { %p194_p11 = scmp.ne.s32.totalorder %s31_s27, %s193_s8  ;;  %p199_p13 = scmp.lt.s32.totalorder %s193_s8, %s193_s8 }
  0x1e   :  { %p200_p0 = por %p199_p13, %p198_p12 }
  0x20   :  { %p201_p1 = pnand %p200_p0, %p194_p11 }
  0x22   :  { %204 = shalt.err (!%p201_p1)
}
  0x23   :  { %36 = dma.hbm_to_vmem [thread:$0]  %s341_s1, 256, %s31_s27, [#allocation6], %s258_s22, %s258_s22, %s259_s23  }
  0x24   :  { %249 = dma.done.wait [#allocation3], 256  }
  0x25   :  { %250 = vsyncadd [#allocation3], 4294967040 }
  0x26   :  { %251 = dma.done.wait [#allocation6], 256  }
  0x27   :  { %252 = vsyncadd [#allocation6], 4294967040  ;;  %v69_v0 = vld [vmem:[#allocation5] sm:$0xff]  ;;  %v43_v1 = vld [vmem:[#allocation2] sm:$0xff]  ;;  %s261_s1 = smov [#allocation8]   ;;  %s262_s11 = smov [#allocation7]  }
  0x28   :  { %v70_v2 = vld [vmem:[#allocation5 + $0x8] sm:$0xff]  ;;  %v71_v3 = vmul.f32 %v69_v0, %v69_v0  ;;  %v45_v4 = vmul.f32 %v43_v1, %v43_v1  ;;  %v44_v5 = vld [vmem:[#allocation2 + $0x8] sm:$0xff]  ;;  %s110_s10 = sshll.u32 %s261_s1, 4  ;;  %s98_s12 = sshll.u32 %s262_s11, 4  ;;  %s111_s10 = int_to_ptr.vmem [resolvable:$true] %s110_s10  ;;  %s309_s12 = int_to_ptr.vmem [resolvable:$true] %s98_s12 }
  0x29   :  { %v72_v6 = vmul.f32 %v70_v2, %v70_v2  ;;  %v46_v7 = vmul.f32 %v44_v5, %v44_v5  ;;  %s205_s13 = scalar_lea.vmem %s111_s10, 128  ;;  %p210_p3 = scmp.lt.s32.totalorder %s111_s10, %s111_s10 }
  0x2a   :  { %73 = vadd.xlane.f32.xlu1 %v71_v3  ;;  %47 = vadd.xlane.f32.xlu0 %v45_v4  ;;  %p206_p2 = scmp.ne.s32.totalorder %s111_s10, %s205_s13  ;;  %p211_p4 = scmp.lt.s32.totalorder %s205_s13, %s205_s13 }
  0x2c   :  { %p212_p5 = por %p211_p4, %p210_p3 }
  0x2e   :  { %75 = vadd.xlane.f32.xlu1 %v72_v6  ;;  %49 = vadd.xlane.f32.xlu0 %v46_v7  ;;  %p213_p6 = pnand %p212_p5, %p206_p2 }
  0xb7   :  { %v74_v8 = vpop.xlane.xlu1 %73  ;;  %v48_v9 = vpop.xlane.xlu0 %47 }
  0xb8   :  { %v77_v10 = vmax.f32 %v74_v8, 1e-24  ;;  %v51_v11 = vmax.f32 %v48_v9, 1e-24 }
  0xba   :  { %153 = vrsqrt.f32 %v51_v11 }
  0xbb   :  { %v76_v12 = vpop.xlane.xlu1 %75  ;;  %v50_v13 = vpop.xlane.xlu0 %49  ;;  %155 = vrsqrt.f32 %v77_v10 }
  0xbc   :  { %v78_v14 = vmax.f32 %v76_v12, 1e-24  ;;  %v52_v15 = vmax.f32 %v50_v13, 1e-24 }
  0xbe   :  { %157 = vrsqrt.f32 %v78_v14 }
  0xbf   :  { %159 = vrsqrt.f32 %v52_v15 }
  0xc4   :  { %v154_v16 = vpop.eup %153 }
  0xc5   :  { %v156_v17 = vpop.eup %155  ;;  %v55_v19 = vmul.f32 5.0, %v154_v16 }
  0xc6   :  { %v81_v21 = vmul.f32 %v156_v17, %v69_v0 }
  0xc7   :  { %v57_v25 = vmul.f32 %v55_v19, %v43_v1 }
  0xc8   :  { %v158_v18 = vpop.eup %157 }
  0xc9   :  { %v160_v20 = vpop.eup %159  ;;  %v82_v22 = vmul.f32 %v158_v18, %v70_v2 }
  0xca   :  { %v56_v23 = vmul.f32 5.0, %v160_v20 }
  0xcb   :  { %v143_v24 = vpack.c.bf16 %v82_v22, %v81_v21 }
  0xcc   :  { %v58_v26 = vmul.f32 %v56_v23, %v44_v5 }
  0xcd   :  { %144 = vst [vmem:[#allocation8] sm:$0xff] %v143_v24  }
  0xce   :  { %v138_v27 = vpack.c.bf16 %v58_v26, %v57_v25 }
  0xcf   :  { %216 = shalt.err (!%p213_p6)
}
  0xd0   :  { %s217_s16 = scalar_lea.hbm %s343_s3, 128 }
  0xd1   :  { %p218_p7 = scmp.ne.s32.totalorder %s343_s3, %s217_s16  ;;  %p221_p8 = scmp.lt.u32.totalorder %s217_s16, %s343_s3 }
  0xd3   :  { %p223_p9 = pnand %p221_p8, %p218_p7 }
  0xd5   :  { %226 = shalt.err (!%p223_p9)
}
  0xd6   :  { %s263_s21 = smov 64   ;;  %s264_s22 = smov 4   ;;  %139 = vst [vmem:[#allocation7] sm:$0xff] %v138_v27  }
  0xd7   :  { %116 = dma.vmem_to_hbm [thread:$0]  %s111_s10, 128, %s343_s3, [#allocation9], %s263_s21, %s263_s21, %s264_s22  }
  0xd8   :  { %s227_s25 = scalar_lea.vmem %s309_s12, 128  ;;  %p232_p11 = scmp.lt.s32.totalorder %s309_s12, %s309_s12 }
  0xd9   :  { %p228_p10 = scmp.ne.s32.totalorder %s309_s12, %s227_s25  ;;  %p233_p12 = scmp.lt.s32.totalorder %s227_s25, %s227_s25 }
  0xdb   :  { %p234_p13 = por %p233_p12, %p232_p11 }
  0xdd   :  { %p235_p0 = pnand %p234_p13, %p228_p10 }
  0xdf   :  { %238 = shalt.err (!%p235_p0)
}
  0xe0   :  { %s239_s28 = scalar_lea.hbm %s342_s2, 128 }
  0xe1   :  { %p240_p1 = scmp.ne.s32.totalorder %s342_s2, %s239_s28  ;;  %p243_p2 = scmp.lt.u32.totalorder %s239_s28, %s342_s2 }
  0xe3   :  { %p245_p3 = pnand %p243_p2, %p240_p1 }
  0xe5   :  { %248 = shalt.err (!%p245_p3)
}
  0xe6   :  { %104 = dma.vmem_to_hbm [thread:$0]  %s309_s12, 128, %s342_s2, [#allocation4], %s263_s21, %s263_s21, %s264_s22  }
  0xe7   :  { %253 = dma.done.wait [#allocation4], 128  }
  0xe8   :  { %254 = vsyncadd [#allocation4], 4294967168 }
  0xe9   :  { %255 = dma.done.wait [#allocation9], 128  }
  0xea   :  { %256 = vsyncadd [#allocation9], 4294967168 }
  0xeb   :  { %123 = vsyncpa [#allocation3], 1 }
  0xec   :  { %124 = vsyncpa [#allocation6], 1 }
  0xed   :  { %125 = vsyncpa [#allocation4], 1 }
  0xee   :  { %126 = vsyncpa [#allocation9], 1 }

</bundles_post_ra>
